<compile_context>
chip_gen: v6e
topology: v6e:2x2x1
jax: 0.10.0
libtpu: 0.0.40
codegen_flags: <defaults>
</compile_context>

<pallas_src>
import math

import jax
import jax.numpy as jnp
import numpy as np
from jax.experimental import pallas as pl
from jax.experimental.pallas import tpu as pltpu

LANES = 128
VMEM_LIMIT = 32 * 1024 * 1024  # scoped-VMEM safe on v5e / v6e / v7x


def _round_up(x, m):
    return ((x + m - 1) // m) * m


def _pad_rows(n):
    # Small N: pad to 128 and use a full padded row per output tile.
    # Large N: pad to 512 so 256 x {2048,1024,512} tiles divide evenly (<=511 pad rows).
    return _round_up(n, 128) if n <= 2048 else _round_up(n, 512)


def _dist_tiling(npad):
    """(TI, TJ) for the pairwise-distance kernel; both divide npad, TJ lane-dense."""
    if npad <= 2048:
        tj = npad
    else:
        tj = max(t for t in (2048, 1024, 512) if npad % t == 0)
    ti = 256 if npad % 256 == 0 else 128
    return ti, tj


def _make_coords_kernel(num_struct_layers):
    """MLP (struct layers, ReLU, eval-mode dropout==identity) + lane-padded final Linear."""

    def kernel(*refs):
        z_ref = refs[0]
        c_ref = refs[-1]
        x = z_ref[...]  # bf16 rows (cast in wrapper)
        for l in range(num_struct_layers):
            w_ref = refs[1 + 2 * l]
            b_ref = refs[2 + 2 * l]
            h = jnp.dot(x, w_ref[...], preferred_element_type=jnp.float32)
            # bias add + ReLU in f32; dropout(training=False) == identity
            x = jnp.maximum(h + b_ref[...], 0.0).astype(jnp.bfloat16)
        wf_ref = refs[1 + 2 * num_struct_layers]
        bf_ref = refs[2 + 2 * num_struct_layers]
        c = jnp.dot(x, wf_ref[...], preferred_element_type=jnp.float32)
        # single unmasked lane-dense (tile, 128) store; cols 3..127 are exact zeros
        c_ref[...] = (c + bf_ref[...]).astype(c_ref.dtype)

    return kernel


def _pdist_kernel(ci_ref, cjt_ref, nj_ref, d_ref):
    """dists tile via d^2 = ||ci||^2 + ||cj||^2 - 2*ci.cj  (MXU dot over padded 128 lanes)."""
    ci_bf = ci_ref[...]                                   # (TI, 128) bf16, cols 3.. are 0
    cjt_bf = cjt_ref[...]                                 # (128, TJ) bf16
    ci_f = ci_bf.astype(jnp.float32)
    ri = jnp.sum(ci_f * ci_f, axis=1, keepdims=True)      # (TI, 1)  lane-reduce (XLU)
    g = jnp.dot(ci_bf, cjt_bf, preferred_element_type=jnp.float32)   # (TI, TJ) MXU
    d2 = ri + nj_ref[...] - 2.0 * g                       # (TI,1)+(1,TJ)-(TI,TJ)
    d_ref[...] = jnp.sqrt(jnp.maximum(d2, 0.0))           # clamp cancellation noise


def struct_pairwise_lr_forward(z, struct_params, final_params, *, interpret=False):
    """Eval-mode forward of StructPairwiseLR.

    z:             [num_cells, in_channels] f32
    struct_params: list of (w [out, in], b [out]) in torch.nn.Linear layout
    final_params:  (w [3, in], b [3])
    returns {'dists': [num_cells, num_cells] f32}
    """
    n, c_in = z.shape
    c_out = final_params[0].shape[0]

    npad = _pad_rows(n)
    ti, tj = _dist_tiling(npad)
    tn1 = max(t for t in (1024, 512, 256, 128) if npad % t == 0)  # MLP row tile

    # zero-pad rows so both kernels use clean, pipelined, lane-dense tiles
    z_pad = jnp.zeros((npad, c_in), jnp.bfloat16).at[:n].set(z.astype(jnp.bfloat16))

    const_map = lambda i: (0, 0)

    # ---- kernel 1: MLP -> lane-padded coords (bf16) ------------------------
    args = [z_pad]
    in_specs = [pl.BlockSpec((tn1, c_in), lambda i: (i, 0))]

    prev = c_in
    for (w, b) in struct_params:
        out_f = w.shape[0]
        args += [w.T.astype(jnp.bfloat16),                     # [in, out], bf16
                 b.reshape(1, -1).astype(jnp.float32)]         # [1, out], f32
        in_specs += [pl.BlockSpec((prev, out_f), const_map),
                     pl.BlockSpec((1, out_f), const_map)]
        prev = out_f

    wf, bf = final_params
    wf_pad = jnp.zeros((prev, LANES), jnp.bfloat16).at[:, :c_out].set(
        wf.T.astype(jnp.bfloat16))
    bf_pad = jnp.zeros((1, LANES), jnp.float32).at[:, :c_out].set(
        bf.reshape(1, -1).astype(jnp.float32))
    args += [wf_pad, bf_pad]
    in_specs += [pl.BlockSpec((prev, LANES), const_map),
                 pl.BlockSpec((1, LANES), const_map)]

    coords_pad = pl.pallas_call(
        _make_coords_kernel(len(struct_params)),
        grid=(npad // tn1,),
        in_specs=in_specs,
        out_specs=pl.BlockSpec((tn1, LANES), lambda i: (i, 0)),
        out_shape=jax.ShapeDtypeStruct((npad, LANES), jnp.bfloat16),
        compiler_params=pltpu.CompilerParams(
            dimension_semantics=("parallel",),
            vmem_limit_bytes=VMEM_LIMIT),
        interpret=interpret,
    )(*args)

    # ---- one-time wrapper-side helpers (O(N*128), tiny vs N^2 dist kernel) --
    coords_t = coords_pad.T                                               # [128, Npad] bf16
    cf = coords_pad.astype(jnp.float32)
    norms = jnp.sum(cf * cf, axis=1).reshape(1, npad)                     # [1, Npad] f32

    # ---- kernel 2: pairwise distances ---------------------------------------
    dists_pad = pl.pallas_call(
        _pdist_kernel,
        grid=(npad // ti, npad // tj),
        in_specs=[pl.BlockSpec((ti, LANES), lambda i, j: (i, 0)),
                  pl.BlockSpec((LANES, tj), lambda i, j: (0, j)),
                  pl.BlockSpec((1, tj), lambda i, j: (0, j))],
        out_specs=pl.BlockSpec((ti, tj), lambda i, j: (i, j)),
        out_shape=jax.ShapeDtypeStruct((npad, npad), jnp.float32),
        compiler_params=pltpu.CompilerParams(
            dimension_semantics=("parallel", "parallel"),
            vmem_limit_bytes=VMEM_LIMIT),
        interpret=interpret,
    )(coords_pad, coords_t, norms)

    return {"dists": dists_pad[:n, :n]}


def torch_linear_init(key, out_features, in_features):
    """Deterministic init mimicking torch.nn.Linear (uniform +/- 1/sqrt(fan_in))."""
    kw, kb = jax.random.split(key)
    bound = 1.0 / math.sqrt(in_features)
    w = jax.random.uniform(kw, (out_features, in_features), jnp.float32, -bound, bound)
    b = jax.random.uniform(kb, (out_features,), jnp.float32, -bound, bound)
    return w, b


if __name__ == "__main__":
    # Small shapes consistent with the module:
    #   in_channels = 16, struct_layers_out_chnls = [32, 64], dropout_prop = 0.5 (eval),
    #   final_dist_layer -> 3 coords, num_cells = 256.
    in_channels = 16
    struct_layers_out_chnls = (32, 64)
    num_cells = 256

    key = jax.random.PRNGKey(0)
    kz, k1, k2, k3 = jax.random.split(key, 4)

    z = jax.random.normal(kz, (num_cells, in_channels), jnp.float32)

    struct_params = []
    prev = in_channels
    for kk, out_f in zip((k1, k2), struct_layers_out_chnls):
        struct_params.append(torch_linear_init(kk, out_f, prev))
        prev = out_f
    final_params = torch_linear_init(k3, 3, prev)

    out = struct_pairwise_lr_forward(z, struct_params, final_params)
    dists = jax.block_until_ready(out["dists"])
    assert dists.shape == (num_cells, num_cells)

    # ---- pure-JAX references ----------------------------------------------
    def reference(z_, bf16):
        x = z_
        for (w, b) in struct_params:
            if bf16:  # same matmul policy as the kernel
                h = jnp.dot(x.astype(jnp.bfloat16), w.T.astype(jnp.bfloat16),
                            preferred_element_type=jnp.float32) + b
            else:     # faithful f32 torch semantics
                h = jnp.dot(x, w.T, precision=jax.lax.Precision.HIGHEST) + b
            x = jnp.maximum(h, 0.0)  # F.dropout(training=False) == identity
        wf, bf = final_params
        if bf16:
            coords = jnp.dot(x.astype(jnp.bfloat16), wf.T.astype(jnp.bfloat16),
                             preferred_element_type=jnp.float32) + bf
        else:
            coords = jnp.dot(x, wf.T, precision=jax.lax.Precision.HIGHEST) + bf
        diffs = coords[None, :, :] - coords[:, None, :]
        return jnp.sqrt(jnp.sum(diffs * diffs, axis=2))

    # Tight check vs a reference with the same bf16-matmul policy (kernel math is right).
    np.testing.assert_allclose(np.asarray(dists), np.asarray(reference(z, bf16=True)),
                               rtol=1e-2, atol=1e-2)
    # Loose check vs the full-f32 torch-equivalent reference (semantic fidelity).
    np.testing.assert_allclose(np.asarray(dists), np.asarray(reference(z, bf16=False)),
                               rtol=5e-2, atol=5e-2)

    print("KERNEL_OK")
</pallas_src>

<mosaic_0001>
module attributes {stable_mosaic.version = 11 : i64} {
  func.func @kernel(%arg0: i32, %arg1: memref<256x16xbf16, #tpu.memory_space<vmem>>, %arg2: memref<16x32xbf16, #tpu.memory_space<vmem>>, %arg3: memref<1x32xf32, #tpu.memory_space<vmem>>, %arg4: memref<32x64xbf16, #tpu.memory_space<vmem>>, %arg5: memref<1x64xf32, #tpu.memory_space<vmem>>, %arg6: memref<64x128xbf16, #tpu.memory_space<vmem>>, %arg7: memref<1x128xf32, #tpu.memory_space<vmem>>, %arg8: memref<256x128xbf16, #tpu.memory_space<vmem>>) attributes {dimension_semantics = [#tpu.dimension_semantics<parallel>], iteration_bounds = array<i64: 1>, scalar_prefetch = 0 : i64, scratch_operands = 0 : i64, tpu.core_type = #tpu.core_type<tc>, window_params = [{transform_indices = @transform_0, window_bounds = array<i64: 256, 16>}, {pipeline_mode = #tpu.pipeline_mode<synchronous>, transform_indices = @transform_1, window_bounds = array<i64: 16, 32>}, {pipeline_mode = #tpu.pipeline_mode<synchronous>, transform_indices = @transform_2, window_bounds = array<i64: 1, 32>}, {pipeline_mode = #tpu.pipeline_mode<synchronous>, transform_indices = @transform_3, window_bounds = array<i64: 32, 64>}, {pipeline_mode = #tpu.pipeline_mode<synchronous>, transform_indices = @transform_4, window_bounds = array<i64: 1, 64>}, {pipeline_mode = #tpu.pipeline_mode<synchronous>, transform_indices = @transform_5, window_bounds = array<i64: 64, 128>}, {pipeline_mode = #tpu.pipeline_mode<synchronous>, transform_indices = @transform_6, window_bounds = array<i64: 1, 128>}, {transform_indices = @transform_7, window_bounds = array<i64: 256, 128>}]} {
    %c0 = arith.constant 0 : index
    %c0_0 = arith.constant 0 : index
    %0 = vector.load %arg1[%c0, %c0_0] : memref<256x16xbf16, #tpu.memory_space<vmem>>, vector<256x16xbf16>
    %c0_1 = arith.constant 0 : index
    %c0_2 = arith.constant 0 : index
    %1 = vector.load %arg2[%c0_1, %c0_2] : memref<16x32xbf16, #tpu.memory_space<vmem>>, vector<16x32xbf16>
    %cst = arith.constant dense<0.000000e+00> : vector<256x32xf32>
    %2 = tpu.matmul %0, %1, %cst {dimension_numbers = #tpu.dot_dimension_numbers<[1], [0], [0], [1], [0, 0, 1, 1], [], []>} : vector<256x16xbf16>, vector<16x32xbf16>, vector<256x32xf32> -> vector<256x32xf32>
    %c0_3 = arith.constant 0 : index
    %c0_4 = arith.constant 0 : index
    %3 = vector.load %arg3[%c0_3, %c0_4] : memref<1x32xf32, #tpu.memory_space<vmem>>, vector<1x32xf32>
    %4 = vector.broadcast %3 : vector<1x32xf32> to vector<256x32xf32>
    %5 = arith.addf %2, %4 : vector<256x32xf32>
    %cst_5 = arith.constant 0.000000e+00 : f32
    %6 = vector.broadcast %cst_5 : f32 to vector<256x32xf32>
    %7 = arith.maximumf %5, %6 : vector<256x32xf32>
    %8 = arith.truncf %7 : vector<256x32xf32> to vector<256x32xbf16>
    %c0_6 = arith.constant 0 : index
    %c0_7 = arith.constant 0 : index
    %9 = vector.load %arg4[%c0_6, %c0_7] : memref<32x64xbf16, #tpu.memory_space<vmem>>, vector<32x64xbf16>
    %cst_8 = arith.constant dense<0.000000e+00> : vector<256x64xf32>
    %10 = tpu.matmul %8, %9, %cst_8 {dimension_numbers = #tpu.dot_dimension_numbers<[1], [0], [0], [1], [0, 0, 1, 1], [], []>} : vector<256x32xbf16>, vector<32x64xbf16>, vector<256x64xf32> -> vector<256x64xf32>
    %c0_9 = arith.constant 0 : index
    %c0_10 = arith.constant 0 : index
    %11 = vector.load %arg5[%c0_9, %c0_10] : memref<1x64xf32, #tpu.memory_space<vmem>>, vector<1x64xf32>
    %12 = vector.broadcast %11 : vector<1x64xf32> to vector<256x64xf32>
    %13 = arith.addf %10, %12 : vector<256x64xf32>
    %cst_11 = arith.constant 0.000000e+00 : f32
    %14 = vector.broadcast %cst_11 : f32 to vector<256x64xf32>
    %15 = arith.maximumf %13, %14 : vector<256x64xf32>
    %16 = arith.truncf %15 : vector<256x64xf32> to vector<256x64xbf16>
    %c0_12 = arith.constant 0 : index
    %c0_13 = arith.constant 0 : index
    %17 = vector.load %arg6[%c0_12, %c0_13] : memref<64x128xbf16, #tpu.memory_space<vmem>>, vector<64x128xbf16>
    %cst_14 = arith.constant dense<0.000000e+00> : vector<256x128xf32>
    %18 = tpu.matmul %16, %17, %cst_14 {dimension_numbers = #tpu.dot_dimension_numbers<[1], [0], [0], [1], [0, 0, 1, 1], [], []>} : vector<256x64xbf16>, vector<64x128xbf16>, vector<256x128xf32> -> vector<256x128xf32>
    %c0_15 = arith.constant 0 : index
    %c0_16 = arith.constant 0 : index
    %19 = vector.load %arg7[%c0_15, %c0_16] : memref<1x128xf32, #tpu.memory_space<vmem>>, vector<1x128xf32>
    %20 = vector.broadcast %19 : vector<1x128xf32> to vector<256x128xf32>
    %21 = arith.addf %18, %20 : vector<256x128xf32>
    %22 = arith.truncf %21 : vector<256x128xf32> to vector<256x128xbf16>
    %c0_17 = arith.constant 0 : index
    %c0_18 = arith.constant 0 : index
    %23 = vector.load %arg8[%c0_17, %c0_18] : memref<256x128xbf16, #tpu.memory_space<vmem>>, vector<256x128xbf16>
    tpu.vector_store %arg8[%c0_17, %c0_18], %22 {strides = array<i32>} : memref<256x128xbf16, #tpu.memory_space<vmem>>, vector<256x128xbf16>,
    return
  }
  func.func @transform_0(%arg0: i32) -> (i32, i32) {
    %c0_i32 = arith.constant 0 : i32
    %c0_i32_0 = arith.constant 0 : i32
    return %arg0, %c0_i32 : i32, i32
  }
  func.func @transform_1(%arg0: i32) -> (i32, i32) {
    %c0_i32 = arith.constant 0 : i32
    %c0_i32_0 = arith.constant 0 : i32
    %c0_i32_1 = arith.constant 0 : i32
    return %c0_i32, %c0_i32_0 : i32, i32
  }
  func.func @transform_2(%arg0: i32) -> (i32, i32) {
    %c0_i32 = arith.constant 0 : i32
    %c0_i32_0 = arith.constant 0 : i32
    %c0_i32_1 = arith.constant 0 : i32
    return %c0_i32, %c0_i32_0 : i32, i32
  }
  func.func @transform_3(%arg0: i32) -> (i32, i32) {
    %c0_i32 = arith.constant 0 : i32
    %c0_i32_0 = arith.constant 0 : i32
    %c0_i32_1 = arith.constant 0 : i32
    return %c0_i32, %c0_i32_0 : i32, i32
  }
  func.func @transform_4(%arg0: i32) -> (i32, i32) {
    %c0_i32 = arith.constant 0 : i32
    %c0_i32_0 = arith.constant 0 : i32
    %c0_i32_1 = arith.constant 0 : i32
    return %c0_i32, %c0_i32_0 : i32, i32
  }
  func.func @transform_5(%arg0: i32) -> (i32, i32) {
    %c0_i32 = arith.constant 0 : i32
    %c0_i32_0 = arith.constant 0 : i32
    %c0_i32_1 = arith.constant 0 : i32
    return %c0_i32, %c0_i32_0 : i32, i32
  }
  func.func @transform_6(%arg0: i32) -> (i32, i32) {
    %c0_i32 = arith.constant 0 : i32
    %c0_i32_0 = arith.constant 0 : i32
    %c0_i32_1 = arith.constant 0 : i32
    return %c0_i32, %c0_i32_0 : i32, i32
  }
  func.func @transform_7(%arg0: i32) -> (i32, i32) {
    %c0_i32 = arith.constant 0 : i32
    %c0_i32_0 = arith.constant 0 : i32
    return %arg0, %c0_i32 : i32, i32
  }
}

</mosaic_0001>

<bundles_post_ra>
// kernel: tpu_custom_call.1
= control target key start
LH: loop header
LB: loop body
LE: loop exit
PB: predicated region body
PF: predicated region fallthrough
CT: control target
= control target key end

     0   :  { %vm155_vm0 = vcmask 130048   ;;  %s1853_s0 = inlined_call_operand.vmem [shape: bf16[256,16], index: 0, kind: input, shape index: {}]   ;;  %s1854_s1 = inlined_call_operand.vmem [shape: bf16[16,32], index: 1, kind: input, shape index: {}]   ;;  %s1855_s2 = inlined_call_operand.vmem [shape: f32[1,32], index: 2, kind: input, shape index: {}]   ;;  %s1856_s3 = inlined_call_operand.vmem [shape: bf16[32,64], index: 3, kind: input, shape index: {}]   ;;  %s1857_s4 = inlined_call_operand.vmem [shape: f32[1,64], index: 4, kind: input, shape index: {}]   ;;  %s1858_s5 = inlined_call_operand.vmem [shape: bf16[64,128], index: 5, kind: input, shape index: {}]   ;;  %s1859_s6 = inlined_call_operand.vmem [shape: f32[1,128], index: 6, kind: input, shape index: {}]   ;;  %s1860_s7 = inlined_call_operand.hbm [shape: bf16[256,128], index: 7, kind: output, shape index: {}]  }
   0x1   :  { %v1522_v0 = vld [vmem:[%s1854_s1] sm:$0xff]   ;;  %v1524_v2 = vld [vmem:[%s1853_s0 + $0x8] sm:$0xff]   ;;  %v1525_v3 = vld [vmem:[%s1853_s0 + $0x10] sm:$0xff]  }
   0x2   :  { %v1523_v1 = vld [vmem:[%s1853_s0] sm:$0xff]   ;;  %1407 = vmatprep.subr.bf16.mxu0 %v1522_v0  ;;  %1517 = vmatprep.subr.bf16.mxu1 %v1522_v0  ;;  %v1526_v4 = vld [vmem:[%s1853_s0 + $0x18] sm:$0xff]   ;;  %v1532_v7 = vld [vmem:[%s1853_s0 + $0x48] sm:$0xff]  }
   0x3   :  { %1408 = vmatpush3.bf16.msra.mxu0 %v1522_v0  ;;  %1409 = vmatprep.mubr.msk.bf16.mxu0 %vm155_vm0, %v1523_v1  ;;  %v1527_v5 = vld [vmem:[%s1853_s0 + $0x20] sm:$0xff]   ;;  %v1533_v8 = vld [vmem:[%s1853_s0 + $0x50] sm:$0xff]   ;;  %v1534_v9 = vld [vmem:[%s1853_s0 + $0x58] sm:$0xff]  }
   0x4   :  { %1518 = vmatpush3.bf16.msra.mxu1 %v1522_v0  ;;  %v1531_v6 = vld [vmem:[%s1853_s0 + $0x40] sm:$0xff]   ;;  %v1528_v10 = vld [vmem:[%s1853_s0 + $0x28] sm:$0xff]   ;;  %v1529_v12 = vld [vmem:[%s1853_s0 + $0x30] sm:$0xff]  }
   0x5   :  { %1425 = vmatprep.mubr.msk.bf16.mxu1 %vm155_vm0, %v1531_v6  ;;  %v1535_v11 = vld [vmem:[%s1853_s0 + $0x60] sm:$0xff]   ;;  %v1539_v13 = vld [vmem:[%s1856_s3 + $0x8] sm:$0xff]  }
   0x6   :  { %1410 = vmatmul.mubr.msk.bf16.vlgmr.msra.gmra.mxu0 %vm155_vm0, %v1524_v2  ;;  %v1540_v14 = vld [vmem:[%s1856_s3] sm:$0xff]   ;;  %1441 = vmatprep.subr.bf16.mxu1 %v1539_v13 }
   0x7   :  { %1413 = vmatprep.mubr.msk.bf16.mxu0 %vm155_vm0, %v1525_v3  ;;  %1426 = vmatmul.mubr.msk.bf16.vlgmr.msra.gmra.mxu1 %vm155_vm0, %v1532_v7 }
   0x8   :  { %1429 = vmatprep.mubr.msk.bf16.mxu1 %vm155_vm0, %v1533_v8  ;;  %1442 = vmatpush3.bf16.msra.mxu1 %v1539_v13 }
   0xe   :  { %1414 = vmatmul.mubr.msk.bf16.gmra.mxu0 %vm155_vm0, %v1526_v4 }
   0xf   :  { %1417 = vmatprep.mubr.msk.bf16.mxu0 %vm155_vm0, %v1527_v5  ;;  %1430 = vmatmul.mubr.msk.bf16.gmra.mxu1 %vm155_vm0, %v1534_v9 }
  0x10   :  { %1433 = vmatprep.mubr.msk.bf16.mxu1 %vm155_vm0, %v1535_v11 }
  0x11   :  { %12 = vsyncpa [#allocation3], 0  ;;  %1443 = vmatprep.subr.bf16.mxu1 %v1540_v14  ;;  %v1536_v15 = vld [vmem:[%s1853_s0 + $0x68] sm:$0xff]   ;;  %v1537_v16 = vld [vmem:[%s1853_s0 + $0x70] sm:$0xff]   ;;  %vm436_vm1 = vcmask 261120   ;;  %vm733_vm2 = vcmask 523264  }
  0x12   :  { %1444 = vmatpush3.bf16.msra.mxu1 %v1540_v14  ;;  %v1530_v17 = vld [vmem:[%s1853_s0 + $0x38] sm:$0xff]   ;;  %v1542_v20 = vld [vmem:[%s1858_s5 + $0x10] sm:$0xff]   ;;  %v1543_v21 = vld [vmem:[%s1858_s5 + $0x8] sm:$0xff]  }
  0x13   :  { %v1538_v18 = vld [vmem:[%s1853_s0 + $0x78] sm:$0xff]   ;;  %v1695_v24 = vld [vmem:[%s1855_s2] ss:$0 sm:$0xff] }
  0x14   :  { %v1541_v19 = vld [vmem:[%s1858_s5 + $0x18] sm:$0xff]  }
  0x15   :  { %1477 = vmatprep.subr.bf16.mxu0 %v1541_v19 }
  0x16   :  { %1418 = vmatmul.mubr.msk.bf16.gmra.mxu0 %vm155_vm0, %v1528_v10 }
  0x17   :  { %1421 = vmatprep.mubr.msk.bf16.mxu0 %vm155_vm0, %v1529_v12  ;;  %1434 = vmatmul.mubr.msk.bf16.gmra.mxu1 %vm155_vm0, %v1536_v15 }
  0x18   :  { %1437 = vmatprep.mubr.msk.bf16.mxu1 %vm155_vm0, %v1537_v16  ;;  %1478 = vmatpush3.bf16.msra.mxu0 %v1541_v19 }
  0x19   :  { %1479 = vmatprep.subr.bf16.mxu0 %v1542_v20 }
  0x1c   :  { %1480 = vmatpush3.bf16.msra.mxu0 %v1542_v20 }
  0x1d   :  { %1481 = vmatprep.subr.bf16.mxu0 %v1543_v21 }
  0x1e   :  { %1422 = vmatmul.mubr.msk.bf16.gmra.mxu0 %vm155_vm0, %v1530_v17 }
  0x1f   :  { %1438 = vmatmul.mubr.msk.bf16.gmra.mxu1 %vm155_vm0, %v1538_v18 }
  0x20   :  { %1482 = vmatpush3.bf16.msra.mxu0 %v1543_v21 }
  0xc6   :  { %v1411_v22 = vpop.f32.mrf.mxu0 }
  0xc7   :  { %v247_v28 = vadd.f32 %v1411_v22, %v1695_v24  ;;  %v1700_v30 = vpop.f32.mrf.mxu1 }
  0xc8   :  { %v238_v23 = vpop.f32.mrf.mxu0 }
  0xc9   :  { %v239_v26 = vadd.f32 %v1695_v24, %v238_v23  ;;  %v302_v34 = vpop.f32.mrf.mxu1  ;;  %v367_v37 = vmax.f32 %v247_v28, 0.0 }
  0xca   :  { %v1412_v25 = vpop.f32.mrf.mxu0  ;;  %v303_v12 = vadd.f32 %v1695_v24, %v302_v34 }
  0xcb   :  { %v250_v27 = vadd.f32 %v1412_v25, %v1695_v24  ;;  %v365_v35 = vmax.f32 %v239_v26, 0.0  ;;  %v1703_v39 = vpop.f32.mrf.mxu1 }
  0xcc   :  { %v241_v29 = vpop.f32.mrf.mxu0  ;;  %v381_v21 = vmax.f32 %v303_v12, 0.0 }
  0xcd   :  { %v242_v31 = vadd.f32 %v1695_v24, %v241_v29  ;;  %v368_v32 = vmax.f32 %v250_v27, 0.0  ;;  %v305_v43 = vpop.f32.mrf.mxu1 }
  0xce   :  { %v1415_v33 = vpop.f32.mrf.mxu0  ;;  %v306_v13 = vadd.f32 %v1695_v24, %v305_v43 }
  0xcf   :  { %v366_v36 = vmax.f32 %v242_v31, 0.0  ;;  %v398_v41 = vpack.c.bf16 %v368_v32, %v367_v37  ;;  %v263_v46 = vadd.f32 %v1415_v33, %v1695_v24  ;;  %v1710_v48 = vpop.f32.mrf.mxu1  ;;  %v314_v37 = vadd.f32 %v1703_v39, %v1695_v24 }
  0xd0   :  { %v254_v38 = vpop.f32.mrf.mxu0  ;;  %v382_v23 = vmax.f32 %v306_v13, 0.0  ;;  %v327_v39 = vadd.f32 %v1710_v48, %v1695_v24 }
  0xd1   :  { %v397_v40 = vpack.c.bf16 %v366_v36, %v365_v35  ;;  %v255_v44 = vadd.f32 %v1695_v24, %v254_v38  ;;  %v318_v52 = vpop.f32.mrf.mxu1  ;;  %v371_v55 = vmax.f32 %v263_v46, 0.0  ;;  %v311_v35 = vadd.f32 %v1700_v30, %v1695_v24 }
  0xd2   :  { %v1416_v42 = vpop.f32.mrf.mxu0  ;;  %v405_v32 = vpack.c.bf16 %v382_v23, %v381_v21  ;;  %v319_v33 = vadd.f32 %v1695_v24, %v318_v52  ;;  %v384_v43 = vmax.f32 %v314_v37, 0.0 }
  0xd3   :  { %v266_v45 = vadd.f32 %v1416_v42, %v1695_v24  ;;  %1445 = vmatprep.mubr.msk.bf16.mxu1 %vm436_vm1, %v397_v40  ;;  %v369_v53 = vmax.f32 %v255_v44, 0.0  ;;  %v1432_v57 = vpop.f32.mrf.mxu1  ;;  %v383_v42 = vmax.f32 %v311_v35, 0.0 }
  0xd4   :  { %v257_v47 = vpop.f32.mrf.mxu0  ;;  %1446 = vmatmul.mubr.msk.bf16.vlgmr.msra.gmra.mxu1 %vm436_vm1, %v398_v41  ;;  %v385_v40 = vmax.f32 %v319_v33, 0.0 }
  0xd5   :  { %v258_v49 = vadd.f32 %v1695_v24, %v257_v47  ;;  %v372_v50 = vmax.f32 %v266_v45, 0.0  ;;  %v321_v61 = vpop.f32.mrf.mxu1  ;;  %v406_v47 = vpack.c.bf16 %v384_v43, %v383_v42 }
  0xd6   :  { %v1419_v51 = vpop.f32.mrf.mxu0  ;;  %v322_v34 = vadd.f32 %v1695_v24, %v321_v61 }
  0xd7   :  { %v370_v54 = vmax.f32 %v258_v49, 0.0  ;;  %v400_v59 = vpack.c.bf16 %v372_v50, %v371_v55  ;;  %v279_v0 = vadd.f32 %v1419_v51, %v1695_v24  ;;  %v1718_v2 = vpop.f32.mrf.mxu1  ;;  %v330_v49 = vadd.f32 %v1432_v57, %v1695_v24 }
  0xd8   :  { %v270_v56 = vpop.f32.mrf.mxu0  ;;  %v386_v41 = vmax.f32 %v322_v34, 0.0  ;;  %v343_v48 = vadd.f32 %v1718_v2, %v1695_v24 }
  0xd9   :  { %v399_v58 = vpack.c.bf16 %v370_v54, %v369_v53  ;;  %v271_v62 = vadd.f32 %v1695_v24, %v270_v56  ;;  %v334_v6 = vpop.f32.mrf.mxu1  ;;  %v375_v9 = vmax.f32 %v279_v0, 0.0  ;;  %v387_v53 = vmax.f32 %v327_v39, 0.0 }
  0xda   :  { %v1420_v60 = vpop.f32.mrf.mxu0  ;;  %v407_v45 = vpack.c.bf16 %v386_v41, %v385_v40  ;;  %v335_v46 = vadd.f32 %v1695_v24, %v334_v6  ;;  %v388_v54 = vmax.f32 %v330_v49, 0.0 }
  0xdb   :  { %v282_v63 = vadd.f32 %v1420_v60, %v1695_v24  ;;  %1449 = vmatprep.mubr.msk.bf16.mxu1 %vm436_vm1, %v399_v58  ;;  %v373_v7 = vmax.f32 %v271_v62, 0.0  ;;  %v1436_v16 = vpop.f32.mrf.mxu1 }
  0xdc   :  { %v273_v1 = vpop.f32.mrf.mxu0  ;;  %1450 = vmatmul.mubr.msk.bf16.gmra.mxu1 %vm436_vm1, %v400_v59  ;;  %v389_v51 = vmax.f32 %v335_v46, 0.0  ;;  %v408_v60 = vpack.c.bf16 %v388_v54, %v387_v53  ;;  %v346_v57 = vadd.f32 %v1436_v16, %v1695_v24 }
  0xdd   :  { %v274_v3 = vadd.f32 %v1695_v24, %v273_v1  ;;  %v376_v4 = vmax.f32 %v282_v63, 0.0  ;;  %v337_v26 = vpop.f32.mrf.mxu1  ;;  %v391_v63 = vmax.f32 %v343_v48, 0.0 }
  0xde   :  { %v1423_v5 = vpop.f32.mrf.mxu0  ;;  %v338_v30 = vadd.f32 %v1695_v24, %v337_v26  ;;  %v392_v0 = vmax.f32 %v346_v57, 0.0 }
  0xdf   :  { %v374_v8 = vmax.f32 %v274_v3, 0.0  ;;  %v402_v14 = vpack.c.bf16 %v376_v4, %v375_v9  ;;  %v295_v19 = vadd.f32 %v1423_v5, %v1695_v24  ;;  %v1439_v38 = vpop.f32.mrf.mxu1 }
  0xe0   :  { %v286_v10 = vpop.f32.mrf.mxu0  ;;  %v390_v52 = vmax.f32 %v338_v30, 0.0  ;;  %v410_v3 = vpack.c.bf16 %v392_v0, %v391_v63  ;;  %v359_v4 = vadd.f32 %v1439_v38, %v1695_v24 }
  0xe1   :  { %v401_v11 = vpack.c.bf16 %v374_v8, %v373_v7  ;;  %v287_v17 = vadd.f32 %v1695_v24, %v286_v10  ;;  %v379_v29 = vmax.f32 %v295_v19, 0.0  ;;  %v350_v44 = vpop.f32.mrf.mxu1  ;;  %v1544_v8 = vld [vmem:[%s1858_s5] sm:$0xff]  }
  0xe2   :  { %v1424_v15 = vpop.f32.mrf.mxu0  ;;  %v409_v56 = vpack.c.bf16 %v390_v52, %v389_v51  ;;  %v351_v58 = vadd.f32 %v1695_v24, %v350_v44  ;;  %v395_v2 = vmax.f32 %v359_v4, 0.0  ;;  %1483 = vmatprep.subr.bf16.mxu0 %v1544_v8 }
  0xe3   :  { %v298_v18 = vadd.f32 %v1424_v15, %v1695_v24  ;;  %1453 = vmatprep.mubr.msk.bf16.mxu1 %vm436_vm1, %v401_v11  ;;  %v377_v27 = vmax.f32 %v287_v17, 0.0  ;;  %v1440_v50 = vpop.f32.mrf.mxu1  ;;  %1484 = vmatpush3.bf16.msra.mxu0 %v1544_v8 }
  0xe4   :  { %v289_v20 = vpop.f32.mrf.mxu0  ;;  %1454 = vmatmul.mubr.msk.bf16.gmra.mxu1 %vm436_vm1, %v402_v14  ;;  %v393_v61 = vmax.f32 %v351_v58, 0.0  ;;  %v362_v5 = vadd.f32 %v1440_v50, %v1695_v24 }
  0xe5   :  { %v290_v22 = vadd.f32 %v1695_v24, %v289_v20  ;;  %v380_v25 = vmax.f32 %v298_v18, 0.0  ;;  %v353_v55 = vpop.f32.mrf.mxu1 }
  0xe6   :  { %v354_v59 = vadd.f32 %v1695_v24, %v353_v55  ;;  %v396_v6 = vmax.f32 %v362_v5, 0.0  ;;  %v1763_v24 = vld [vmem:[%s1857_s4] ss:$0 sm:$0xff] }
  0xe7   :  { %v378_v28 = vmax.f32 %v290_v22, 0.0  ;;  %v404_v36 = vpack.c.bf16 %v380_v25, %v379_v29 }
  0xe8   :  { %v394_v62 = vmax.f32 %v354_v59, 0.0  ;;  %v412_v7 = vpack.c.bf16 %v396_v6, %v395_v2 }
  0xe9   :  { %v403_v31 = vpack.c.bf16 %v378_v28, %v377_v27 }
  0xea   :  { %v411_v1 = vpack.c.bf16 %v394_v62, %v393_v61 }
  0xeb   :  { %1457 = vmatprep.mubr.msk.bf16.mxu1 %vm436_vm1, %v403_v31 }
  0xec   :  { %1458 = vmatmul.mubr.msk.bf16.gmra.mxu1 %vm436_vm1, %v404_v36 }
  0xed   :  { %1461 = vmatprep.mubr.msk.bf16.mxu1 %vm436_vm1, %v405_v32 }
  0xf4   :  { %1462 = vmatmul.mubr.msk.bf16.gmra.mxu1 %vm436_vm1, %v406_v47 }
  0xf5   :  { %1465 = vmatprep.mubr.msk.bf16.mxu1 %vm436_vm1, %v407_v45 }
  0xfc   :  { %1466 = vmatmul.mubr.msk.bf16.gmra.mxu1 %vm436_vm1, %v408_v60 }
  0xfd   :  { %1469 = vmatprep.mubr.msk.bf16.mxu1 %vm436_vm1, %v409_v56 }
 0x104   :  { %1470 = vmatmul.mubr.msk.bf16.gmra.mxu1 %vm436_vm1, %v410_v3 }
 0x105   :  { %1473 = vmatprep.mubr.msk.bf16.mxu1 %vm436_vm1, %v411_v1 }
 0x10c   :  { %1474 = vmatmul.mubr.msk.bf16.gmra.mxu1 %vm436_vm1, %v412_v7 }
 0x194   :  { %v1447_v9 = vpop.f32.mrf.mxu1 }
 0x195   :  { %v528_v14 = vadd.f32 %v1447_v9, %v1763_v24 }
 0x196   :  { %v519_v10 = vpop.f32.mrf.mxu1 }
 0x197   :  { %v520_v12 = vadd.f32 %v1763_v24, %v519_v10  ;;  %v648_v21 = vmax.f32 %v528_v14, 0.0 }
 0x198   :  { %v1448_v11 = vpop.f32.mrf.mxu1 }
 0x199   :  { %v531_v13 = vadd.f32 %v1448_v11, %v1763_v24  ;;  %v646_v19 = vmax.f32 %v520_v12, 0.0 }
 0x19a   :  { %v522_v15 = vpop.f32.mrf.mxu1 }
 0x19b   :  { %v523_v16 = vadd.f32 %v1763_v24, %v522_v15  ;;  %v649_v17 = vmax.f32 %v531_v13, 0.0 }
 0x19c   :  { %v1451_v18 = vpop.f32.mrf.mxu1 }
 0x19d   :  { %v647_v20 = vmax.f32 %v523_v16, 0.0  ;;  %v679_v25 = vpack.c.bf16 %v649_v17, %v648_v21  ;;  %v544_v29 = vadd.f32 %v1451_v18, %v1763_v24 }
 0x19e   :  { %v535_v22 = vpop.f32.mrf.mxu1 }
 0x19f   :  { %v678_v23 = vpack.c.bf16 %v647_v20, %v646_v19  ;;  %v536_v27 = vadd.f32 %v1763_v24, %v535_v22  ;;  %v652_v37 = vmax.f32 %v544_v29, 0.0 }
 0x1a0   :  { %v1452_v26 = vpop.f32.mrf.mxu1 }
 0x1a1   :  { %v547_v28 = vadd.f32 %v1452_v26, %v1763_v24  ;;  %1485 = vmatprep.mubr.msk.bf16.mxu0 %vm733_vm2, %v678_v23  ;;  %v650_v35 = vmax.f32 %v536_v27, 0.0 }
 0x1a2   :  { %v538_v31 = vpop.f32.mrf.mxu1  ;;  %1486 = vmatmul.mubr.msk.bf16.vlgmr.msra.gmra.mxu0 %vm733_vm2, %v679_v25 }
 0x1a3   :  { %v539_v32 = vadd.f32 %v1763_v24, %v538_v31  ;;  %v653_v33 = vmax.f32 %v547_v28, 0.0 }
 0x1a4   :  { %v1455_v34 = vpop.f32.mrf.mxu1 }
 0x1a5   :  { %v651_v36 = vmax.f32 %v539_v32, 0.0  ;;  %v681_v41 = vpack.c.bf16 %v653_v33, %v652_v37  ;;  %v560_v45 = vadd.f32 %v1455_v34, %v1763_v24 }
 0x1a6   :  { %v551_v38 = vpop.f32.mrf.mxu1 }
 0x1a7   :  { %v680_v40 = vpack.c.bf16 %v651_v36, %v650_v35  ;;  %v552_v43 = vadd.f32 %v1763_v24, %v551_v38  ;;  %v656_v51 = vmax.f32 %v560_v45, 0.0 }
 0x1a8   :  { %v1456_v42 = vpop.f32.mrf.mxu1 }
 0x1a9   :  { %v563_v44 = vadd.f32 %v1456_v42, %v1763_v24  ;;  %1489 = vmatprep.mubr.msk.bf16.mxu0 %vm733_vm2, %v680_v40  ;;  %v654_v49 = vmax.f32 %v552_v43, 0.0 }
 0x1aa   :  { %v554_v46 = vpop.f32.mrf.mxu1  ;;  %1490 = vmatmul.mubr.msk.bf16.gmra.mxu0 %vm733_vm2, %v681_v41 }
 0x1ab   :  { %v555_v30 = vadd.f32 %v1763_v24, %v554_v46  ;;  %v657_v47 = vmax.f32 %v563_v44, 0.0 }
 0x1ac   :  { %v1459_v39 = vpop.f32.mrf.mxu1 }
 0x1ad   :  { %v655_v50 = vmax.f32 %v555_v30, 0.0  ;;  %v683_v54 = vpack.c.bf16 %v657_v47, %v656_v51  ;;  %v576_v59 = vadd.f32 %v1459_v39, %v1763_v24 }
 0x1ae   :  { %v567_v52 = vpop.f32.mrf.mxu1 }
 0x1af   :  { %v682_v53 = vpack.c.bf16 %v655_v50, %v654_v49  ;;  %v568_v56 = vadd.f32 %v1763_v24, %v567_v52  ;;  %v660_v0 = vmax.f32 %v576_v59, 0.0 }
 0x1b0   :  { %v1460_v55 = vpop.f32.mrf.mxu1 }
 0x1b1   :  { %v579_v58 = vadd.f32 %v1460_v55, %v1763_v24  ;;  %1493 = vmatprep.mubr.msk.bf16.mxu0 %vm733_vm2, %v682_v53  ;;  %v658_v62 = vmax.f32 %v568_v56, 0.0 }
 0x1b2   :  { %v570_v60 = vpop.f32.mrf.mxu1  ;;  %1494 = vmatmul.mubr.msk.bf16.gmra.mxu0 %vm733_vm2, %v683_v54 }
 0x1b3   :  { %v571_v48 = vadd.f32 %v1763_v24, %v570_v60  ;;  %v661_v57 = vmax.f32 %v579_v58, 0.0 }
 0x1b4   :  { %v1463_v61 = vpop.f32.mrf.mxu1 }
 0x1b5   :  { %v659_v63 = vmax.f32 %v571_v48, 0.0  ;;  %v685_v4 = vpack.c.bf16 %v661_v57, %v660_v0  ;;  %v592_v7 = vadd.f32 %v1463_v61, %v1763_v24  ;;  %v1816_v57 = vld [vmem:[%s1859_s6] ss:$0 sm:$0xff]  ;;  %s1567_s6 = smov [#allocation2]  }
 0x1b6   :  { %v583_v1 = vpop.f32.mrf.mxu1  ;;  %s1108_s23 = sshll.u32 %s1567_s6, 4  ;;  %s1109_s23 = int_to_ptr.vmem [resolvable:$true] %s1108_s23 }
 0x1b7   :  { %v684_v3 = vpack.c.bf16 %v659_v63, %v658_v62  ;;  %v584_v2 = vadd.f32 %v1763_v24, %v583_v1  ;;  %v664_v14 = vmax.f32 %v592_v7, 0.0  ;;  %s1545_s24 = scalar_lea.vmem %s1109_s23, 2048  ;;  %p1550_p1 = scmp.lt.s32.totalorder %s1109_s23, %s1109_s23 }
 0x1b8   :  { %v1464_v5 = vpop.f32.mrf.mxu1  ;;  %p1546_p0 = scmp.ne.s32.totalorder %s1109_s23, %s1545_s24  ;;  %p1551_p2 = scmp.lt.s32.totalorder %s1545_s24, %s1545_s24 }
 0x1b9   :  { %v595_v6 = vadd.f32 %v1464_v5, %v1763_v24  ;;  %1497 = vmatprep.mubr.msk.bf16.mxu0 %vm733_vm2, %v684_v3  ;;  %v662_v12 = vmax.f32 %v584_v2, 0.0 }
 0x1ba   :  { %v586_v8 = vpop.f32.mrf.mxu1  ;;  %1498 = vmatmul.mubr.msk.bf16.gmra.mxu0 %vm733_vm2, %v685_v4  ;;  %p1552_p3 = por %p1551_p2, %p1550_p1 }
 0x1bb   :  { %v587_v9 = vadd.f32 %v1763_v24, %v586_v8  ;;  %v665_v10 = vmax.f32 %v595_v6, 0.0 }
 0x1bc   :  { %v1467_v11 = vpop.f32.mrf.mxu1  ;;  %p1553_p4 = pnand %p1552_p3, %p1546_p0 }
 0x1bd   :  { %v663_v13 = vmax.f32 %v587_v9, 0.0  ;;  %v687_v17 = vpack.c.bf16 %v665_v10, %v664_v14  ;;  %v608_v21 = vadd.f32 %v1467_v11, %v1763_v24 }
 0x1be   :  { %v599_v15 = vpop.f32.mrf.mxu1 }
 0x1bf   :  { %v686_v16 = vpack.c.bf16 %v663_v13, %v662_v12  ;;  %v600_v19 = vadd.f32 %v1763_v24, %v599_v15  ;;  %v668_v29 = vmax.f32 %v608_v21, 0.0 }
 0x1c0   :  { %v1468_v18 = vpop.f32.mrf.mxu1 }
 0x1c1   :  { %v611_v20 = vadd.f32 %v1468_v18, %v1763_v24  ;;  %1501 = vmatprep.mubr.msk.bf16.mxu0 %vm733_vm2, %v686_v16  ;;  %v666_v27 = vmax.f32 %v600_v19, 0.0 }
 0x1c2   :  { %v602_v22 = vpop.f32.mrf.mxu1  ;;  %1502 = vmatmul.mubr.msk.bf16.gmra.mxu0 %vm733_vm2, %v687_v17 }
 0x1c3   :  { %v603_v23 = vadd.f32 %v1763_v24, %v602_v22  ;;  %v669_v25 = vmax.f32 %v611_v20, 0.0 }
 0x1c4   :  { %v1471_v26 = vpop.f32.mrf.mxu1 }
 0x1c5   :  { %v667_v28 = vmax.f32 %v603_v23, 0.0  ;;  %v689_v33 = vpack.c.bf16 %v669_v25, %v668_v29  ;;  %v624_v37 = vadd.f32 %v1471_v26, %v1763_v24 }
 0x1c6   :  { %v615_v31 = vpop.f32.mrf.mxu1 }
 0x1c7   :  { %v688_v32 = vpack.c.bf16 %v667_v28, %v666_v27  ;;  %v616_v35 = vadd.f32 %v1763_v24, %v615_v31  ;;  %v672_v45 = vmax.f32 %v624_v37, 0.0 }
 0x1c8   :  { %v1472_v34 = vpop.f32.mrf.mxu1 }
 0x1c9   :  { %v627_v36 = vadd.f32 %v1472_v34, %v1763_v24  ;;  %1505 = vmatprep.mubr.msk.bf16.mxu0 %vm733_vm2, %v688_v32  ;;  %v670_v43 = vmax.f32 %v616_v35, 0.0 }
 0x1ca   :  { %v618_v38 = vpop.f32.mrf.mxu1  ;;  %1506 = vmatmul.mubr.msk.bf16.gmra.mxu0 %vm733_vm2, %v689_v33 }
 0x1cb   :  { %v619_v40 = vadd.f32 %v1763_v24, %v618_v38  ;;  %v673_v41 = vmax.f32 %v627_v36, 0.0 }
 0x1cc   :  { %v1475_v42 = vpop.f32.mrf.mxu1 }
 0x1cd   :  { %v671_v44 = vmax.f32 %v619_v40, 0.0  ;;  %v691_v47 = vpack.c.bf16 %v673_v41, %v672_v45  ;;  %v640_v51 = vadd.f32 %v1475_v42, %v1763_v24 }
 0x1ce   :  { %v631_v46 = vpop.f32.mrf.mxu1 }
 0x1cf   :  { %v690_v30 = vpack.c.bf16 %v671_v44, %v670_v43  ;;  %v632_v49 = vadd.f32 %v1763_v24, %v631_v46  ;;  %v676_v58 = vmax.f32 %v640_v51, 0.0 }
 0x1d0   :  { %v1476_v39 = vpop.f32.mrf.mxu1 }
 0x1d1   :  { %v643_v50 = vadd.f32 %v1476_v39, %v1763_v24  ;;  %1509 = vmatprep.mubr.msk.bf16.mxu0 %vm733_vm2, %v690_v30  ;;  %v674_v55 = vmax.f32 %v632_v49, 0.0 }
 0x1d2   :  { %v634_v52 = vpop.f32.mrf.mxu1  ;;  %1510 = vmatmul.mubr.msk.bf16.gmra.mxu0 %vm733_vm2, %v691_v47 }
 0x1d3   :  { %v635_v53 = vadd.f32 %v1763_v24, %v634_v52  ;;  %v677_v54 = vmax.f32 %v643_v50, 0.0 }
 0x1d5   :  { %v675_v56 = vmax.f32 %v635_v53, 0.0  ;;  %v693_v60 = vpack.c.bf16 %v677_v54, %v676_v58 }
 0x1d7   :  { %v692_v59 = vpack.c.bf16 %v675_v56, %v674_v55 }
 0x1d9   :  { %1513 = vmatprep.mubr.msk.bf16.mxu0 %vm733_vm2, %v692_v59 }
 0x1da   :  { %1514 = vmatmul.mubr.msk.bf16.gmra.mxu0 %vm733_vm2, %v693_v60 }
 0x262   :  { %v1487_v48 = vpop.f32.mrf.mxu0 }
 0x263   :  { %v825_v24 = vadd.f32 %v1487_v48, %v1816_v57 }
 0x264   :  { %v816_v61 = vpop.f32.mrf.mxu0 }
 0x265   :  { %v817_v1 = vadd.f32 %v1816_v57, %v816_v61 }
 0x266   :  { %v1488_v62 = vpop.f32.mrf.mxu0 }
 0x267   :  { %v828_v63 = vadd.f32 %v1488_v62, %v1816_v57 }
 0x268   :  { %v819_v0 = vpop.f32.mrf.mxu0 }
 0x269   :  { %v1265_v3 = vpack.c.bf16 %v828_v63, %v825_v24  ;;  %v820_v4 = vadd.f32 %v1816_v57, %v819_v0 }
 0x26a   :  { %v1491_v5 = vpop.f32.mrf.mxu0 }
 0x26b   :  { %1337 = vst [vmem:[#allocation2 + $0x8] sm:$0xff] %v1265_v3   ;;  %v1260_v2 = vpack.c.bf16 %v820_v4, %v817_v1  ;;  %v841_v8 = vadd.f32 %v1491_v5, %v1816_v57 }
 0x26c   :  { %v832_v6 = vpop.f32.mrf.mxu0 }
 0x26d   :  { %1261 = vst [vmem:[#allocation2] sm:$0xff] %v1260_v2   ;;  %v833_v11 = vadd.f32 %v1816_v57, %v832_v6 }
 0x26e   :  { %v1492_v7 = vpop.f32.mrf.mxu0 }
 0x26f   :  { %v844_v9 = vadd.f32 %v1492_v7, %v1816_v57 }
 0x270   :  { %v835_v10 = vpop.f32.mrf.mxu0 }
 0x271   :  { %v1275_v12 = vpack.c.bf16 %v844_v9, %v841_v8  ;;  %v836_v13 = vadd.f32 %v1816_v57, %v835_v10 }
 0x272   :  { %v1495_v14 = vpop.f32.mrf.mxu0 }
 0x273   :  { %1339 = vst [vmem:[#allocation2 + $0x18] sm:$0xff] %v1275_v12   ;;  %v1270_v15 = vpack.c.bf16 %v836_v13, %v833_v11  ;;  %v857_v18 = vadd.f32 %v1495_v14, %v1816_v57 }
 0x274   :  { %v848_v16 = vpop.f32.mrf.mxu0 }
 0x275   :  { %1338 = vst [vmem:[#allocation2 + $0x10] sm:$0xff] %v1270_v15   ;;  %v849_v21 = vadd.f32 %v1816_v57, %v848_v16 }
 0x276   :  { %v1496_v17 = vpop.f32.mrf.mxu0 }
 0x277   :  { %v860_v19 = vadd.f32 %v1496_v17, %v1816_v57 }
 0x278   :  { %v851_v20 = vpop.f32.mrf.mxu0 }
 0x279   :  { %v1285_v22 = vpack.c.bf16 %v860_v19, %v857_v18  ;;  %v852_v23 = vadd.f32 %v1816_v57, %v851_v20 }
 0x27a   :  { %v1499_v25 = vpop.f32.mrf.mxu0 }
 0x27b   :  { %1341 = vst [vmem:[#allocation2 + $0x28] sm:$0xff] %v1285_v22   ;;  %v1280_v26 = vpack.c.bf16 %v852_v23, %v849_v21  ;;  %v873_v29 = vadd.f32 %v1499_v25, %v1816_v57 }
 0x27c   :  { %v864_v27 = vpop.f32.mrf.mxu0 }
 0x27d   :  { %1340 = vst [vmem:[#allocation2 + $0x20] sm:$0xff] %v1280_v26   ;;  %v865_v33 = vadd.f32 %v1816_v57, %v864_v27 }
 0x27e   :  { %v1500_v28 = vpop.f32.mrf.mxu0 }
 0x27f   :  { %v876_v31 = vadd.f32 %v1500_v28, %v1816_v57 }
 0x280   :  { %v867_v32 = vpop.f32.mrf.mxu0 }
 0x281   :  { %v1295_v34 = vpack.c.bf16 %v876_v31, %v873_v29  ;;  %v868_v35 = vadd.f32 %v1816_v57, %v867_v32 }
 0x282   :  { %v1503_v36 = vpop.f32.mrf.mxu0 }
 0x283   :  { %1343 = vst [vmem:[#allocation2 + $0x38] sm:$0xff] %v1295_v34   ;;  %v1290_v37 = vpack.c.bf16 %v868_v35, %v865_v33  ;;  %v889_v41 = vadd.f32 %v1503_v36, %v1816_v57 }
 0x284   :  { %v880_v38 = vpop.f32.mrf.mxu0 }
 0x285   :  { %1342 = vst [vmem:[#allocation2 + $0x30] sm:$0xff] %v1290_v37   ;;  %v881_v44 = vadd.f32 %v1816_v57, %v880_v38 }
 0x286   :  { %v1504_v40 = vpop.f32.mrf.mxu0 }
 0x287   :  { %v892_v42 = vadd.f32 %v1504_v40, %v1816_v57 }
 0x288   :  { %v883_v43 = vpop.f32.mrf.mxu0 }
 0x289   :  { %v1305_v45 = vpack.c.bf16 %v892_v42, %v889_v41  ;;  %v884_v46 = vadd.f32 %v1816_v57, %v883_v43 }
 0x28a   :  { %v1507_v30 = vpop.f32.mrf.mxu0 }
 0x28b   :  { %1345 = vst [vmem:[#allocation2 + $0x48] sm:$0xff] %v1305_v45   ;;  %v1300_v47 = vpack.c.bf16 %v884_v46, %v881_v44  ;;  %v905_v50 = vadd.f32 %v1507_v30, %v1816_v57 }
 0x28c   :  { %v896_v39 = vpop.f32.mrf.mxu0 }
 0x28d   :  { %1344 = vst [vmem:[#allocation2 + $0x40] sm:$0xff] %v1300_v47   ;;  %v897_v53 = vadd.f32 %v1816_v57, %v896_v39 }
 0x28e   :  { %v1508_v49 = vpop.f32.mrf.mxu0 }
 0x28f   :  { %v908_v51 = vadd.f32 %v1508_v49, %v1816_v57 }
 0x290   :  { %v899_v52 = vpop.f32.mrf.mxu0 }
 0x291   :  { %v1315_v54 = vpack.c.bf16 %v908_v51, %v905_v50  ;;  %v900_v55 = vadd.f32 %v1816_v57, %v899_v52 }
 0x292   :  { %v1511_v56 = vpop.f32.mrf.mxu0 }
 0x293   :  { %1347 = vst [vmem:[#allocation2 + $0x58] sm:$0xff] %v1315_v54   ;;  %v1310_v58 = vpack.c.bf16 %v900_v55, %v897_v53  ;;  %v921_v48 = vadd.f32 %v1511_v56, %v1816_v57 }
 0x294   :  { %v912_v59 = vpop.f32.mrf.mxu0 }
 0x295   :  { %1346 = vst [vmem:[#allocation2 + $0x50] sm:$0xff] %v1310_v58   ;;  %v913_v24 = vadd.f32 %v1816_v57, %v912_v59 }
 0x296   :  { %v1512_v60 = vpop.f32.mrf.mxu0 }
 0x297   :  { %v924_v61 = vadd.f32 %v1512_v60, %v1816_v57 }
 0x298   :  { %v915_v62 = vpop.f32.mrf.mxu0 }
 0x299   :  { %v1325_v63 = vpack.c.bf16 %v924_v61, %v921_v48  ;;  %v916_v0 = vadd.f32 %v1816_v57, %v915_v62 }
 0x29a   :  { %v1515_v1 = vpop.f32.mrf.mxu0 }
 0x29b   :  { %1349 = vst [vmem:[#allocation2 + $0x68] sm:$0xff] %v1325_v63   ;;  %v1320_v3 = vpack.c.bf16 %v916_v0, %v913_v24  ;;  %v937_v2 = vadd.f32 %v1515_v1, %v1816_v57 }
 0x29c   :  { %v928_v4 = vpop.f32.mrf.mxu0 }
 0x29d   :  { %1348 = vst [vmem:[#allocation2 + $0x60] sm:$0xff] %v1320_v3   ;;  %v929_v8 = vadd.f32 %v1816_v57, %v928_v4 }
 0x29e   :  { %v1516_v5 = vpop.f32.mrf.mxu0 }
 0x29f   :  { %v940_v6 = vadd.f32 %v1516_v5, %v1816_v57 }
 0x2a0   :  { %v931_v7 = vpop.f32.mrf.mxu0 }
 0x2a1   :  { %v1335_v9 = vpack.c.bf16 %v940_v6, %v937_v2  ;;  %v932_v10 = vadd.f32 %v1816_v57, %v931_v7 }
 0x2a3   :  { %1351 = vst [vmem:[#allocation2 + $0x78] sm:$0xff] %v1335_v9   ;;  %v1330_v11 = vpack.c.bf16 %v932_v10, %v929_v8 }
 0x2a5   :  { %1350 = vst [vmem:[#allocation2 + $0x70] sm:$0xff] %v1330_v11  }
 0x2a6   :  { %1556 = shalt.err (!%p1553_p4)
}
 0x2a7   :  { %s1568_s25 = smov 64   ;;  %s1569_s26 = smov 4  }
 0x2a8   :  { %1114 = dma.vmem_to_hbm [thread:$0]  %s1109_s23, 2048, %s1860_s7, [#allocation3], %s1568_s25, %s1568_s25, %s1569_s26  }
 0x2a9   :  { %1565 = dma.done.wait [#allocation3], 2048  }
 0x2aa   :  { %1566 = vsyncadd [#allocation3], 4294965248 }
 0x2ab   :  { %1118 = vsyncpa [#allocation3], 1 }

</bundles_post_ra>
